<compile_context>
chip_gen: v5e
topology: v5e:2x2
jax: 0.10.0
libtpu: 0.0.40
codegen_flags: <defaults>
</compile_context>

<pallas_src>
import jax
import jax.numpy as jnp
from jax.experimental import pallas as pl
from jax.experimental.pallas import tpu as pltpu


C_COND = 2     # channels of x[1]
C_HID = 32     # hidden channels of each 1x1-conv branch
C_FEAT = 64    # channels of x[0] / output


# ---------------------------------------------------------------------------
# Pallas kernel: fused SFT (both branches + modulation epilogue) for one
# (image, spatial-tile) grid point.  Blocks are (1, C, T): spatial tile T
# (multiple of 128) on lanes, channels on sublanes -> lane-dense loads/stores.
# ---------------------------------------------------------------------------
def _sft_kernel(x0_ref, x1_ref, w0a_ref, w0b_ref, b0_ref, w2_ref, b2_ref,
                out_ref):
    x0 = x0_ref[0].astype(jnp.float32)                 # (C_FEAT, T) f32
    x1 = x1_ref[0].astype(jnp.float32)                 # (C_COND, T) f32

    # conv0 (2 -> 64, scale+shift branches concatenated) on the VPU:
    # K=2 is far too shallow to be worth MXU pushes.  f32 VPU math (v5e-safe).
    h = (w0a_ref[...] * x1[0:1, :]                     # (64,1)*(1,T) sublane bcast
         + w0b_ref[...] * x1[1:2, :]
         + b0_ref[...])                                # (64, T) f32
    h = jnp.maximum(h, 0.1 * h)                        # leaky_relu, slope 0.1

    # conv1 (32 -> 64, both branches) as one block-diagonal matmul
    # (128, 64) @ (64, T): bf16 MXU operands, f32 accumulation.
    r = jnp.dot(w2_ref[...], h.astype(jnp.bfloat16),
                preferred_element_type=jnp.float32) + b2_ref[...]   # (128, T)

    scale_p1 = r[0:C_FEAT, :]                          # scale + 1 (+1 baked into b2)
    shift = r[C_FEAT:2 * C_FEAT, :]

    # SFT modulation epilogue in f32; cast only at the final store.
    out_ref[0] = (x0 * scale_p1 + shift).astype(out_ref.dtype)


# ---------------------------------------------------------------------------
# Tiling helper: block size always bounded by max_tile; pad HW only if there
# is no decent multiple-of-128 divisor.
# ---------------------------------------------------------------------------
def _round_up(x, m):
    return (x + m - 1) // m * m


def _choose_tiling(hw, max_tile=8192, min_tile=1024):
    """Returns (tile, hw_padded) with tile % 128 == 0, hw_padded % tile == 0."""
    hw128 = _round_up(hw, 128)
    max_tile = max(128, max_tile - max_tile % 128)
    if hw128 <= max_tile:
        return hw128, hw128
    # Prefer an exact multiple-of-128 divisor (no wasted DMA bytes).
    t = max_tile
    while t >= min_tile:
        if hw128 % t == 0:
            return t, hw128
        t -= 128
    # Awkward HW: keep the block bounded and pad the spatial axis instead.
    return max_tile, _round_up(hw128, max_tile)


# ---------------------------------------------------------------------------
# Host-side parameter folding (done once, outside the kernel).
# ---------------------------------------------------------------------------
def _prepare_fused_params(params):
    ws0, bs0, ws1, bs1, wh0, bh0, wh1, bh1 = params
    # First layer: concatenate scale/shift branches -> (64, 2); split the two
    # input-channel columns so the kernel does plain (64,1)x(1,T) FMAs.
    w0 = jnp.concatenate([ws0, wh0], axis=0).astype(jnp.float32)       # (64, 2)
    b0 = jnp.concatenate([bs0, bh0], axis=0).astype(jnp.float32)       # (64, 1)
    w0a = w0[:, 0:1]                                                    # (64, 1)
    w0b = w0[:, 1:2]                                                    # (64, 1)
    # Second layer: block-diagonal [ws1 0; 0 wh1] -> (128, 64), bf16 MXU operand.
    z = jnp.zeros_like(ws1)
    w2 = jnp.concatenate(
        [jnp.concatenate([ws1, z], axis=1),
         jnp.concatenate([z, wh1], axis=1)], axis=0).astype(jnp.bfloat16)  # (128, 64)
    # Bake the "+1" of the modulation into the scale bias.
    b2 = jnp.concatenate([bs1 + 1.0, bh1], axis=0).astype(jnp.float32)     # (128, 1)
    return w0a, w0b, b0, w2, b2


# ---------------------------------------------------------------------------
# Wrapper
# ---------------------------------------------------------------------------
def sft_layer_pallas(x0, x1, fused_params, *, max_tile=8192):
    """x0: (N, 64, H, W) feature map; x1: (N, 2, H, W) condition map.
    Output dtype follows x0.dtype (bf16 in -> bf16 out)."""
    n, c_feat, h, w = x0.shape
    _, c_cond, _, _ = x1.shape
    hw = h * w
    out_dtype = x0.dtype

    # NCHW -> (N, C, HW): pure reshape, no transpose / extra HBM traffic.
    x0f = x0.reshape(n, c_feat, hw)
    x1f = x1.reshape(n, c_cond, hw)

    tile, hw_pad = _choose_tiling(hw, max_tile)
    if hw_pad != hw:
        pad = hw_pad - hw
        x0f = jnp.pad(x0f, ((0, 0), (0, 0), (0, pad)))
        x1f = jnp.pad(x1f, ((0, 0), (0, 0), (0, pad)))

    w0a, w0b, b0, w2, b2 = fused_params

    def tiled(c):
        return pl.BlockSpec((1, c, tile), lambda i, j: (i, 0, j))

    def full2d(shape):
        return pl.BlockSpec(shape, lambda i, j: (0, 0))

    # Explicit scoped-VMEM budget: covers double-buffered x0/x1/out blocks with
    # headroom; above the v5e 16 MiB default, below v7x's 64 MiB physical.
    blk_bytes = tile * (c_feat * x0f.dtype.itemsize
                        + c_feat * jnp.dtype(out_dtype).itemsize
                        + c_cond * x1f.dtype.itemsize)
    vmem_limit = int(min(56 * 1024 * 1024, max(32 * 1024 * 1024, 4 * blk_bytes)))

    out = pl.pallas_call(
        _sft_kernel,
        out_shape=jax.ShapeDtypeStruct((n, c_feat, hw_pad), out_dtype),
        grid_spec=pltpu.PrefetchScalarGridSpec(
            num_scalar_prefetch=0,
            grid=(n, hw_pad // tile),
            in_specs=[
                tiled(c_feat),                    # x0 block
                tiled(c_cond),                    # x1 block
                full2d(w0a.shape),                # conv0 weight, cond channel 0
                full2d(w0b.shape),                # conv0 weight, cond channel 1
                full2d(b0.shape),                 # conv0 bias (both branches)
                full2d(w2.shape),                 # conv1 block-diag weight (bf16)
                full2d(b2.shape),                 # conv1 bias (+1 baked in)
            ],
            out_specs=tiled(c_feat),
        ),
        compiler_params=pltpu.CompilerParams(
            dimension_semantics=("parallel", "parallel"),
            vmem_limit_bytes=vmem_limit),
    )(x0f, x1f, w0a, w0b, b0, w2, b2)

    if hw_pad != hw:
        out = out[:, :, :hw]
    return out.reshape(n, c_feat, h, w)


# ---------------------------------------------------------------------------
# Parameters (deterministic, synthetic) and pure-JAX reference.
# ---------------------------------------------------------------------------
def make_sft_params(key):
    ks = jax.random.split(key, 8)
    s = 0.1

    def conv_w(k, c_out, c_in):
        return s * jax.random.normal(k, (c_out, c_in), jnp.float32)

    def conv_b(k, c_out):
        return s * jax.random.normal(k, (c_out, 1), jnp.float32)

    ws0 = conv_w(ks[0], C_HID, C_COND)
    bs0 = conv_b(ks[1], C_HID)
    ws1 = conv_w(ks[2], C_FEAT, C_HID)
    bs1 = conv_b(ks[3], C_FEAT)
    wh0 = conv_w(ks[4], C_HID, C_COND)
    bh0 = conv_b(ks[5], C_HID)
    wh1 = conv_w(ks[6], C_FEAT, C_HID)
    bh1 = conv_b(ks[7], C_FEAT)
    return (ws0, bs0, ws1, bs1, wh0, bh0, wh1, bh1)


def sft_reference(x0, x1, params):
    """Pure-JAX f32 reference mirroring the PyTorch SFTLayer (NCHW 1x1 convs)."""
    ws0, bs0, ws1, bs1, wh0, bh0, wh1, bh1 = params
    n, c_cond, h, w = x1.shape
    x1f = x1.astype(jnp.float32).reshape(n, c_cond, h * w)

    def lrelu(v):
        return jnp.where(v >= 0, v, 0.1 * v)

    hs = lrelu(jnp.einsum('oc,ncp->nop', ws0, x1f) + bs0[None])
    scale = jnp.einsum('oc,ncp->nop', ws1, hs) + bs1[None]
    hh = lrelu(jnp.einsum('oc,ncp->nop', wh0, x1f) + bh0[None])
    shift = jnp.einsum('oc,ncp->nop', wh1, hh) + bh1[None]

    x0f = x0.astype(jnp.float32).reshape(n, x0.shape[1], h * w)
    out = x0f * (scale + 1.0) + shift
    return out.reshape(x0.shape)


# ---------------------------------------------------------------------------
# SFTLayer module wrapper
# ---------------------------------------------------------------------------
class SFTLayerPallas:
    def __init__(self, params):
        self.params = params                       # raw PyTorch-style conv params
        self.fused = _prepare_fused_params(params)  # folded once, host-side

    def forward(self, x):
        # x is a pair [feature_map (N,64,H,W), condition_map (N,2,H,W)]
        return sft_layer_pallas(x[0], x[1], self.fused)


if __name__ == "__main__":
    key = jax.random.PRNGKey(0)
    kx0, kx1, kp = jax.random.split(key, 3)

    N, H, W = 2, 16, 16
    x0 = jax.random.normal(kx0, (N, C_FEAT, H, W), jnp.float32)   # feature map
    x1 = jax.random.normal(kx1, (N, C_COND, H, W), jnp.float32)   # condition map

    params = make_sft_params(kp)
    module = SFTLayerPallas(params)

    out = module.forward([x0, x1])
    jax.block_until_ready(out)
    ref = sft_reference(x0, x1, params)

    assert out.shape == (N, C_FEAT, H, W)
    assert out.dtype == x0.dtype
    # The 32->64 conv uses bf16 MXU operands (f32 accumulation), so tolerance
    # is looser than a pure-f32 kernel would allow.
    assert jnp.allclose(out, ref, atol=2e-2, rtol=2e-2), \
        float(jnp.max(jnp.abs(out - ref)))

    # bf16 feature-map I/O path: output dtype follows the input, math stays f32.
    out_bf16 = module.forward([x0.astype(jnp.bfloat16), x1.astype(jnp.bfloat16)])
    jax.block_until_ready(out_bf16)
    assert out_bf16.dtype == jnp.bfloat16
    assert jnp.allclose(out_bf16.astype(jnp.float32), ref, atol=1e-1, rtol=1e-1)

    print("KERNEL_OK")
</pallas_src>

<mosaic_0001>
module attributes {stable_mosaic.version = 11 : i64} {
  func.func @_sft_kernel(%arg0: i32, %arg1: i32, %arg2: memref<1x64x256xf32, #tpu.memory_space<vmem>>, %arg3: memref<1x2x256xf32, #tpu.memory_space<vmem>>, %arg4: memref<64x1xf32, #tpu.memory_space<vmem>>, %arg5: memref<64x1xf32, #tpu.memory_space<vmem>>, %arg6: memref<64x1xf32, #tpu.memory_space<vmem>>, %arg7: memref<128x64xbf16, #tpu.memory_space<vmem>>, %arg8: memref<128x1xf32, #tpu.memory_space<vmem>>, %arg9: memref<1x64x256xf32, #tpu.memory_space<vmem>>) attributes {dimension_semantics = [#tpu.dimension_semantics<parallel>, #tpu.dimension_semantics<parallel>], iteration_bounds = array<i64: 2, 1>, scalar_prefetch = 0 : i64, scratch_operands = 0 : i64, tpu.core_type = #tpu.core_type<tc>, window_params = [{transform_indices = @transform_0, window_bounds = array<i64: 1, 64, 256>}, {transform_indices = @transform_1, window_bounds = array<i64: 1, 2, 256>}, {pipeline_mode = #tpu.pipeline_mode<synchronous>, transform_indices = @transform_2, window_bounds = array<i64: 64, 1>}, {pipeline_mode = #tpu.pipeline_mode<synchronous>, transform_indices = @transform_3, window_bounds = array<i64: 64, 1>}, {pipeline_mode = #tpu.pipeline_mode<synchronous>, transform_indices = @transform_4, window_bounds = array<i64: 64, 1>}, {pipeline_mode = #tpu.pipeline_mode<synchronous>, transform_indices = @transform_5, window_bounds = array<i64: 128, 64>}, {pipeline_mode = #tpu.pipeline_mode<synchronous>, transform_indices = @transform_6, window_bounds = array<i64: 128, 1>}, {transform_indices = @transform_7, window_bounds = array<i64: 1, 64, 256>}]} {
    %c0 = arith.constant 0 : index
    %c0_0 = arith.constant 0 : index
    %c0_1 = arith.constant 0 : index
    %0 = vector.load %arg2[%c0, %c0_0, %c0_1] : memref<1x64x256xf32, #tpu.memory_space<vmem>>, vector<1x64x256xf32>
    %1 = vector.shape_cast %0 : vector<1x64x256xf32> to vector<64x256xf32>
    %c0_2 = arith.constant 0 : index
    %c0_3 = arith.constant 0 : index
    %c0_4 = arith.constant 0 : index
    %2 = vector.load %arg3[%c0_2, %c0_3, %c0_4] : memref<1x2x256xf32, #tpu.memory_space<vmem>>, vector<1x2x256xf32>
    %3 = vector.shape_cast %2 : vector<1x2x256xf32> to vector<2x256xf32>
    %c0_5 = arith.constant 0 : index
    %c0_6 = arith.constant 0 : index
    %4 = vector.load %arg4[%c0_5, %c0_6] : memref<64x1xf32, #tpu.memory_space<vmem>>, vector<64x1xf32>
    %5 = vector.extract_strided_slice %3 {offsets = [0, 0], sizes = [1, 256], strides = [1, 1]} : vector<2x256xf32> to vector<1x256xf32>
    %6 = vector.broadcast %4 : vector<64x1xf32> to vector<64x256xf32>
    %7 = vector.broadcast %5 : vector<1x256xf32> to vector<64x256xf32>
    %8 = arith.mulf %6, %7 : vector<64x256xf32>
    %c0_7 = arith.constant 0 : index
    %c0_8 = arith.constant 0 : index
    %9 = vector.load %arg5[%c0_7, %c0_8] : memref<64x1xf32, #tpu.memory_space<vmem>>, vector<64x1xf32>
    %10 = vector.extract_strided_slice %3 {offsets = [1, 0], sizes = [1, 256], strides = [1, 1]} : vector<2x256xf32> to vector<1x256xf32>
    %11 = vector.broadcast %9 : vector<64x1xf32> to vector<64x256xf32>
    %12 = vector.broadcast %10 : vector<1x256xf32> to vector<64x256xf32>
    %13 = arith.mulf %11, %12 : vector<64x256xf32>
    %14 = arith.addf %8, %13 : vector<64x256xf32>
    %c0_9 = arith.constant 0 : index
    %c0_10 = arith.constant 0 : index
    %15 = vector.load %arg6[%c0_9, %c0_10] : memref<64x1xf32, #tpu.memory_space<vmem>>, vector<64x1xf32>
    %16 = vector.broadcast %15 : vector<64x1xf32> to vector<64x256xf32>
    %17 = arith.addf %14, %16 : vector<64x256xf32>
    %cst = arith.constant 1.000000e-01 : f32
    %18 = vector.broadcast %cst : f32 to vector<64x256xf32>
    %19 = arith.mulf %18, %17 : vector<64x256xf32>
    %20 = arith.maximumf %17, %19 : vector<64x256xf32>
    %c0_11 = arith.constant 0 : index
    %c0_12 = arith.constant 0 : index
    %21 = vector.load %arg7[%c0_11, %c0_12] : memref<128x64xbf16, #tpu.memory_space<vmem>>, vector<128x64xbf16>
    %22 = arith.truncf %20 : vector<64x256xf32> to vector<64x256xbf16>
    %cst_13 = arith.constant dense<0.000000e+00> : vector<128x256xf32>
    %23 = tpu.matmul %21, %22, %cst_13 {dimension_numbers = #tpu.dot_dimension_numbers<[1], [0], [0], [1], [0, 0, 1, 1], [], []>} : vector<128x64xbf16>, vector<64x256xbf16>, vector<128x256xf32> -> vector<128x256xf32>
    %c0_14 = arith.constant 0 : index
    %c0_15 = arith.constant 0 : index
    %24 = vector.load %arg8[%c0_14, %c0_15] : memref<128x1xf32, #tpu.memory_space<vmem>>, vector<128x1xf32>
    %25 = vector.broadcast %24 : vector<128x1xf32> to vector<128x256xf32>
    %26 = arith.addf %23, %25 : vector<128x256xf32>
    %27 = vector.extract_strided_slice %26 {offsets = [0, 0], sizes = [64, 256], strides = [1, 1]} : vector<128x256xf32> to vector<64x256xf32>
    %28 = vector.extract_strided_slice %26 {offsets = [64, 0], sizes = [64, 256], strides = [1, 1]} : vector<128x256xf32> to vector<64x256xf32>
    %29 = arith.mulf %1, %27 : vector<64x256xf32>
    %30 = arith.addf %29, %28 : vector<64x256xf32>
    %c0_16 = arith.constant 0 : index
    %c0_17 = arith.constant 0 : index
    %c0_18 = arith.constant 0 : index
    %31 = vector.load %arg9[%c0_16, %c0_17, %c0_18] : memref<1x64x256xf32, #tpu.memory_space<vmem>>, vector<1x64x256xf32>
    %32 = vector.shape_cast %31 : vector<1x64x256xf32> to vector<64x256xf32>
    %33 = vector.shape_cast %30 : vector<64x256xf32> to vector<1x64x256xf32>
    tpu.vector_store %arg9[%c0_16, %c0_17, %c0_18], %33 {strides = array<i32>} : memref<1x64x256xf32, #tpu.memory_space<vmem>>, vector<1x64x256xf32>,
    return
  }
  func.func @transform_0(%arg0: i32, %arg1: i32) -> (i32, i32, i32) {
    %c0_i32 = arith.constant 0 : i32
    %c0_i32_0 = arith.constant 0 : i32
    return %arg0, %c0_i32, %arg1 : i32, i32, i32
  }
  func.func @transform_1(%arg0: i32, %arg1: i32) -> (i32, i32, i32) {
    %c0_i32 = arith.constant 0 : i32
    %c0_i32_0 = arith.constant 0 : i32
    return %arg0, %c0_i32, %arg1 : i32, i32, i32
  }
  func.func @transform_2(%arg0: i32, %arg1: i32) -> (i32, i32) {
    %c0_i32 = arith.constant 0 : i32
    %c0_i32_0 = arith.constant 0 : i32
    %c0_i32_1 = arith.constant 0 : i32
    return %c0_i32, %c0_i32_0 : i32, i32
  }
  func.func @transform_3(%arg0: i32, %arg1: i32) -> (i32, i32) {
    %c0_i32 = arith.constant 0 : i32
    %c0_i32_0 = arith.constant 0 : i32
    %c0_i32_1 = arith.constant 0 : i32
    return %c0_i32, %c0_i32_0 : i32, i32
  }
  func.func @transform_4(%arg0: i32, %arg1: i32) -> (i32, i32) {
    %c0_i32 = arith.constant 0 : i32
    %c0_i32_0 = arith.constant 0 : i32
    %c0_i32_1 = arith.constant 0 : i32
    return %c0_i32, %c0_i32_0 : i32, i32
  }
  func.func @transform_5(%arg0: i32, %arg1: i32) -> (i32, i32) {
    %c0_i32 = arith.constant 0 : i32
    %c0_i32_0 = arith.constant 0 : i32
    %c0_i32_1 = arith.constant 0 : i32
    return %c0_i32, %c0_i32_0 : i32, i32
  }
  func.func @transform_6(%arg0: i32, %arg1: i32) -> (i32, i32) {
    %c0_i32 = arith.constant 0 : i32
    %c0_i32_0 = arith.constant 0 : i32
    %c0_i32_1 = arith.constant 0 : i32
    return %c0_i32, %c0_i32_0 : i32, i32
  }
  func.func @transform_7(%arg0: i32, %arg1: i32) -> (i32, i32, i32) {
    %c0_i32 = arith.constant 0 : i32
    %c0_i32_0 = arith.constant 0 : i32
    return %arg0, %c0_i32, %arg1 : i32, i32, i32
  }
}

</mosaic_0001>

<bundles_post_ra>
// kernel: tpu_custom_call.1
= control target key start
LH: loop header
LB: loop body
LE: loop exit
PB: predicated region body
PF: predicated region fallthrough
CT: control target
= control target key end

     0   :  { %12 = vsyncpa [#allocation3], 0  ;;  %s1783_s0 = inlined_call_operand.hbm [shape: f32[2,64,256], index: 0, kind: input, shape index: {}]   ;;  %s1784_s1 = inlined_call_operand.vmem [shape: f32[2,2,256], index: 1, kind: input, shape index: {}]   ;;  %s1785_s2 = inlined_call_operand.vmem [shape: f32[64,1], index: 2, kind: input, shape index: {}]   ;;  %s1786_s3 = inlined_call_operand.vmem [shape: f32[64,1], index: 3, kind: input, shape index: {}]   ;;  %s1787_s4 = inlined_call_operand.vmem [shape: f32[64,1], index: 4, kind: input, shape index: {}]   ;;  %s1788_s5 = inlined_call_operand.vmem [shape: bf16[128,64], index: 5, kind: input, shape index: {}]   ;;  %s1789_s6 = inlined_call_operand.vmem [shape: f32[128,1], index: 6, kind: input, shape index: {}]   ;;  %s1790_s7 = inlined_call_operand.hbm [shape: f32[2,64,256], index: 7, kind: output, shape index: {}]  }
   0x1   :  { %14 = vsyncpa [#allocation3 + $0x1], 0 }
   0x2   :  { %15 = vsyncpa [#allocation4], 0 }
   0x3   :  { %17 = vsyncpa [#allocation4 + $0x1], 0  ;;  %s1393_s24 = smov 0   ;;  %s1395_s25 = smov 0  }
   0x4   :  { %s1397_s26 = smov 0   ;;  %s1399_s27 = smov 0  }
   0x5   :  { %s1401_s28 = smov 0   ;;  %s1403_s29 = smov 0  }
   0x6 LB: > { %1793 = sst [smem:[#allocation8_spill]] %s1342_s28  ;;  %s1080_s30 = sadd.s32 4294967295, %s1346_s29   ;;  %s1346_s29 = sphi %s1403_s29, %s23_s29   ;;  %s1342_s28 = sphi %s1401_s28, %s1800_s28   ;;  %s1338_s27 = sphi %s1399_s27, %s1799_s27   ;;  %s1334_s26 = sphi %s1397_s26, %s1803_s26   ;;  %s1330_s25 = sphi %s1395_s25, %s1802_s25   ;;  %s1326_s24 = sphi %s1393_s24, %s1801_s24  }
   0x7   : > { %s1081_s8 = sadd.s32 4294967294, %s1346_s29   ;;  %s35_s9 = sadd.s32 1, %s1342_s28 }
   0x8   : > { %s44_s10 = sadd.s32 1, %s1334_s26  ;;  %p37_p0 = scmp.ge.s32.totalorder %s35_s9, 2 }
   0x9   : > { %p51_p1 = scmp.ne.s32.totalorder %s1334_s26, %s1330_s25  ;;  %p52_p2 = scmp.eq.s32.totalorder %s1346_s29, 0 }
   0xa   : > { %p57_p3 = scmp.ne.s32.totalorder %s1330_s25, %s1326_s24  ;;  %s1805_s9 = smov (%p37_p0, %s35_s9), 0 }
   0xb   : > { %1794 = sst [smem:[#allocation9_spill]] %s1805_s9  ;;  %p1434_p4 = por %p52_p2, %p51_p1 }
   0xc   : > { %p58_p5 = scmp.eq.s32.totalorder %s1080_s30, 0  ;;  %s39_s12 = ssub.s32 %s1342_s28, %s1805_s9 }
   0xd   : > { %p216_p6 = scmp.eq.s32.totalorder %s1080_s30, 1  ;;  %p42_p7 = scmp.eq.s32.totalorder %s39_s12, 0 }
   0xe   : > { %p1440_p8 = por %p58_p5, %p57_p3  ;;  %p222_p10 = scmp.eq.s32.totalorder %s1081_s8, 1 }
   0xf   : > { %p1444_p9 = por %p216_p6, %p51_p1  ;;  %p1083_p12 = scmp.ge.s32.totalorder %s1346_s29, 2 }
  0x10   : > { %s1449_s15 = scalar_select %p42_p7, %s1334_s26, %s44_s10  }
  0x11   : > { %p1451_p11 = por %p222_p10, %p57_p3  ;;  %p1176_p13 = scmp.lt.s32.totalorder %s1346_s29, 2 }
  0x12   : > { %s257_s17 = sand.u32 1, %s1334_s26   ;;  %s1145_s19 = sshll.u32 %s1342_s28, 7 }
  0x13   : > { %s1084_s18 = sshll.u32 %s257_s17, 7  ;;  %s268_s22 = scalar_lea.hbm %s1783_s0, %s1145_s19 }
  0x14   : > { %s261_s23 = scalar_lea.vmem [#allocation2], %s1084_s18  ;;  %s269_s12 = sshll.u32 %s268_s22, 4  ;;  %s270_s12 = int_to_ptr.hbm [resolvable:$true] %s269_s12 }
  0x15   : > { %s271_s30 = sshll.u32 %s261_s23, 4  ;;  %p1169_p0 = pnand %p1176_p13, %p1434_p4  ;;  %s272_s30 = int_to_ptr.vmem [resolvable:$true] %s271_s30 }
  0x16   : > { %p1087_p1 = scmp.ge.s32.totalorder %s1346_s29, 1  ;;  %s258_s8 = scalar_lea.sflag [#allocation3], %s257_s17 }
  0x17   : > { %s1348_s10 = smov 256   ;;  %s1349_s9 = smov 16  }
  0x18   : > { %1171 = dma.hbm_to_vmem [thread:$0]  (!%p1169_p0), %s270_s12, 2048, %s272_s30, %s258_s8, %s1348_s10, %s1348_s10, %s1349_s9  }
  0x19   : > { %p292_p2 = scmp.lt.s32.totalorder %s1346_s29, 3 }
  0x1b   : > { %p293_p3 = pnand %p1087_p1, %p292_p2 }
  0x1c   : > { %s1467_s28 = sand.u32 (!%p293_p3), 1, %s1330_s25  }
  0x1d   : > { %296 = sbr.rel (%p293_p3) target bundleno = 421 (0x1a5), region = 48  ;;  %s1088_s18 = sshll.u32 (!%p293_p3), %s1467_s28, 7 }
  0x1e   : > { %s299_s19 = scalar_lea.sflag (!%p293_p3), [#allocation3], %s1467_s28  ;;  %s1473_s11 = scalar_lea.vmem (!%p293_p3), [#allocation2], %s1088_s18 }
  0x22   : > { %1317 = dma.done.wait (%p1440_p8), %s299_s19, 2048  }
  0x23   : > { %1319 = vsyncadd (%p1440_p8), %s299_s19, 4294965248  ;;  %v1350_v0 = vmov 0   ;;  %v450_v1 = vld [vmem:[%s1786_s3 + $0x30] sm:$0xff]  ;;  %v377_v3 = vld [vmem:[%s1785_s2 + $0x20] sm:$0xff]  ;;  %p345_p4 = scmp.lt.s32.totalorder %s1338_s27, 1  ;;  %vm786_vm0 = vcmask 523264  }
  0x24   : > { %1233 = vset.pattern.permute.xlu2 %v1350_v0  ;;  %1232 = vset.pattern.permute.xlu1 %v1350_v0  ;;  %v379_v2 = vld [vmem:[%s1785_s2 + $0x30] sm:$0xff]  ;;  %v451_v4 = vld [vmem:[%s1786_s3 + $0x38] sm:$0xff]  ;;  %v378_v6 = vld [vmem:[%s1785_s2 + $0x28] sm:$0xff]  ;;  %s1702_s23 = scalar_lea.vmem [#allocation5], %s1088_s18  ;;  %s1155_s18 = sshll.u32 %s1338_s27, 7 }
  0x25   : > { %1231 = vset.pattern.permute.xlu0 %v1350_v0  ;;  %484 = vperm.xlu1 %1232, %v450_v1   ;;  %v380_v5 = vld [vmem:[%s1785_s2 + $0x38] sm:$0xff]  ;;  %v449_v7 = vld [vmem:[%s1786_s3 + $0x28] sm:$0xff]  ;;  %v448_v8 = vld [vmem:[%s1786_s3 + $0x20] sm:$0xff]  ;;  %s346_s12 = scalar_select %p345_p4, %s1338_s27, 1 }
  0x26   : > { %413 = vperm.xlu0 %1231, %v379_v2   ;;  %403 = vperm.xlu2 %1233, %v377_v3   ;;  %v536_v9 = vld [vmem:[%s1787_s4 + $0x30] sm:$0xff]  ;;  %v537_v10 = vld [vmem:[%s1787_s4 + $0x38] sm:$0xff]  ;;  %v534_v15 = vld [vmem:[%s1787_s4 + $0x20] sm:$0xff]  ;;  %s972_s27 = sshll.u32 %s1702_s23, 4  ;;  %s958_s10 = scalar_lea.sflag [#allocation4], %s1467_s28  ;;  %s973_s27 = int_to_ptr.vmem [resolvable:$true] %s972_s27 }
  0x27   : > { %v375_v11 = vld [vmem:[%s1785_s2 + $0x10] sm:$0xff]  ;;  %v376_v12 = vld [vmem:[%s1785_s2 + $0x18] sm:$0xff]  ;;  %v535_v16 = vld [vmem:[%s1787_s4 + $0x28] sm:$0xff]  ;;  %s1146_s8 = sshll.u32 %s346_s12, 2  ;;  %s971_s12 = scalar_lea.hbm %s1790_s7, %s1155_s18 }
  0x28   : > { %v446_v13 = vld [vmem:[%s1786_s3 + $0x10] sm:$0xff]  ;;  %v447_v14 = vld [vmem:[%s1786_s3 + $0x18] sm:$0xff]  ;;  %v373_v17 = vld [vmem:[%s1785_s2] sm:$0xff]  ;;  %s352_s9 = scalar_lea.vmem %s1784_s1, %s1146_s8  ;;  %s974_s8 = sshll.u32 %s971_s12, 4  ;;  %s975_s8 = int_to_ptr.hbm [resolvable:$true] %s974_s8 }
  0x29   : > { %v374_v18 = vld [vmem:[%s1785_s2 + $0x8] sm:$0xff]  ;;  %v444_v19 = vld [vmem:[%s1786_s3] sm:$0xff]  ;;  %v532_v21 = vld [vmem:[%s1787_s4 + $0x10] sm:$0xff]  ;;  %s1278_s19 = sshra.s32 %s975_s8, 4  ;;  %s1284_s20 = scalar_lea.hbm %s1790_s7, 256  ;;  %s1279_s19 = int_to_ptr.hbm [resolvable:$true] %s1278_s19 }
  0x2a   : > { %v445_v20 = vld [vmem:[%s1786_s3 + $0x8] sm:$0xff]  ;;  %v533_v22 = vld [vmem:[%s1787_s4 + $0x18] sm:$0xff]  ;;  %v530_v23 = vld [vmem:[%s1787_s4] sm:$0xff]  ;;  %p1285_p8 = scmp.lt.s32.totalorder %s1279_s19, %s1790_s7 }
  0x2b   : > { %v531_v24 = vld [vmem:[%s1787_s4 + $0x8] sm:$0xff]  ;;  %v650_v25 = vld [vmem:[%s1789_s6] sm:$0xff]  ;;  %v652_v27 = vld [vmem:[%s1789_s6 + $0x10] sm:$0xff] }
  0x2c   : > { %v651_v26 = vld [vmem:[%s1789_s6 + $0x8] sm:$0xff]  ;;  %v653_v28 = vld [vmem:[%s1789_s6 + $0x18] sm:$0xff]  ;;  %v654_v29 = vld [vmem:[%s1789_s6 + $0x20] sm:$0xff] }
  0x2d   : > { %489 = vperm.xlu1 %1232, %v451_v4   ;;  %v655_v30 = vld [vmem:[%s1789_s6 + $0x28] sm:$0xff]  ;;  %v656_v31 = vld [vmem:[%s1789_s6 + $0x30] sm:$0xff]  ;;  %v657_v32 = vld [vmem:[%s1789_s6 + $0x38] sm:$0xff] }
  0x2e   : > { %418 = vperm.xlu0 %1231, %v380_v5   ;;  %408 = vperm.xlu2 %1233, %v378_v6   ;;  %v658_v33 = vld [vmem:[%s1789_s6 + $0x40] sm:$0xff]  ;;  %v659_v34 = vld [vmem:[%s1789_s6 + $0x48] sm:$0xff]  ;;  %v660_v35 = vld [vmem:[%s1789_s6 + $0x50] sm:$0xff] }
  0x2f   : > { %v661_v36 = vld [vmem:[%s1789_s6 + $0x58] sm:$0xff]  ;;  %v662_v37 = vld [vmem:[%s1789_s6 + $0x60] sm:$0xff]  ;;  %v663_v38 = vld [vmem:[%s1789_s6 + $0x68] sm:$0xff] }
  0x30   : > { %v664_v39 = vld [vmem:[%s1789_s6 + $0x70] sm:$0xff]  ;;  %v665_v41 = vld [vmem:[%s1789_s6 + $0x78] sm:$0xff]  ;;  %v372_v45 = vld [vmem:[%s352_s9] sm:$0xf] }
  0x31   : > { %v422_v46 = vperm.slane %v372_v45, 0  ;;  %v423_v47 = vperm.slane %v372_v45, 2  ;;  %v492_v48 = vperm.slane %v372_v45, 1  ;;  %v493_v49 = vperm.slane %v372_v45, 3 }
  0x33   : > { %v1606_v51 = vperm.slane %v422_v46, 0  ;;  %v1608_v52 = vperm.slane %v423_v47, 0  ;;  %v1610_v53 = vperm.slane %v492_v48, 1  ;;  %v1612_v54 = vperm.slane %v493_v49, 1 }
  0x35   : > { %479 = vperm.xlu1 %1232, %v449_v7  }
  0x36   : > { %474 = vperm.xlu0 %1231, %v448_v8   ;;  %570 = vperm.xlu2 %1233, %v536_v9  }
  0x3d   : > { %393 = vperm.xlu1 %1232, %v375_v11  }
  0x3e   : > { %575 = vperm.xlu0 %1231, %v537_v10   ;;  %398 = vperm.xlu2 %1233, %v376_v12  }
  0x45   : > { %469 = vperm.xlu1 %1232, %v447_v14  }
  0x46   : > { %464 = vperm.xlu0 %1231, %v446_v13   ;;  %560 = vperm.xlu2 %1233, %v534_v15  }
  0x4d   : > { %383 = vperm.xlu1 %1232, %v373_v17  }
  0x4e   : > { %565 = vperm.xlu0 %1231, %v535_v16   ;;  %388 = vperm.xlu2 %1233, %v374_v18  }
  0x55   : > { %459 = vperm.xlu1 %1232, %v445_v20  }
  0x56   : > { %454 = vperm.xlu0 %1231, %v444_v19   ;;  %550 = vperm.xlu2 %1233, %v532_v21  }
  0x5d   : > { %540 = vperm.xlu1 %1232, %v530_v23  }
  0x5e   : > { %555 = vperm.xlu0 %1231, %v533_v22   ;;  %545 = vperm.xlu2 %1233, %v531_v24  }
  0x65   : > { %673 = vperm.xlu1 %1232, %v651_v26  }
  0x66   : > { %668 = vperm.xlu0 %1231, %v650_v25   ;;  %678 = vperm.xlu2 %1233, %v652_v27  }
  0x6d   : > { %688 = vperm.xlu1 %1232, %v654_v29  }
  0x6e   : > { %683 = vperm.xlu0 %1231, %v653_v28   ;;  %693 = vperm.xlu2 %1233, %v655_v30  }
  0x75   : > { %703 = vperm.xlu1 %1232, %v657_v32  }
  0x76   : > { %698 = vperm.xlu0 %1231, %v656_v31   ;;  %708 = vperm.xlu2 %1233, %v658_v33  }
  0x7d   : > { %718 = vperm.xlu1 %1232, %v660_v35  }
  0x7e   : > { %713 = vperm.xlu0 %1231, %v659_v34   ;;  %723 = vperm.xlu2 %1233, %v661_v36  }
  0x80   : > { %v404_v40 = vpop.permute.xlu2 %403 }
  0x81   : > { %v436_v25 = vmul.f32 %v1606_v51, %v404_v40  ;;  %v437_v26 = vmul.f32 %v1608_v52, %v404_v40 }
  0x85   : > { %733 = vperm.xlu1 %1232, %v663_v38  }
  0x86   : > { %728 = vperm.xlu0 %1231, %v662_v37   ;;  %738 = vperm.xlu2 %1233, %v664_v39  }
  0x88   : > { %v1601_v42 = vpop.permute.xlu2 %408 }
  0x89   : > { %v438_v36 = vmul.f32 %v1606_v51, %v1601_v42  ;;  %v439_v37 = vmul.f32 %v1608_v52, %v1601_v42 }
  0x8e   : > { %743 = vperm.xlu0 %1231, %v665_v41  }
  0x90   : > { %v571_v50 = vpop.permute.xlu2 %570 }
  0x97   : > { %v485_v43 = vpop.permute.xlu1 %484 }
  0x98   : > { %v414_v44 = vpop.permute.xlu0 %413  ;;  %v510_v57 = vmul.f32 %v1610_v53, %v485_v43  ;;  %v511_v58 = vmul.f32 %v1612_v54, %v485_v43  ;;  %v1618_v61 = vpop.permute.xlu2 %398 }
  0x99   : > { %v440_v59 = vmul.f32 %v1606_v51, %v414_v44  ;;  %v441_v60 = vmul.f32 %v1608_v52, %v414_v44 }
  0x9b   : > { %v526_v62 = vadd.f32 %v510_v57, %v440_v59  ;;  %v527_v63 = vadd.f32 %v511_v58, %v441_v60 }
  0x9d   : > { %v590_v6 = vadd.f32 %v571_v50, %v526_v62  ;;  %v591_v7 = vadd.f32 %v571_v50, %v527_v63 }
  0x9f   : > { %v490_v55 = vpop.permute.xlu1 %489  ;;  %v606_v12 = vmul.f32 0.1, %v590_v6  ;;  %v607_v13 = vmul.f32 0.1, %v591_v7 }
  0xa0   : > { %v419_v56 = vpop.permute.xlu0 %418  ;;  %v512_v2 = vmul.f32 %v1610_v53, %v490_v55  ;;  %v513_v3 = vmul.f32 %v1612_v54, %v490_v55  ;;  %v561_v14 = vpop.permute.xlu2 %560 }
  0xa1   : > { %v442_v4 = vmul.f32 %v1606_v51, %v419_v56  ;;  %v443_v5 = vmul.f32 %v1608_v52, %v419_v56  ;;  %v622_v19 = vmax.f32 %v590_v6, %v606_v12  ;;  %v623_v20 = vmax.f32 %v591_v7, %v607_v13 }
  0xa3   : > { %v528_v8 = vadd.f32 %v512_v2, %v442_v4  ;;  %v529_v9 = vadd.f32 %v513_v3, %v443_v5 }
  0xa7   : > { %v480_v0 = vpop.permute.xlu1 %479 }
  0xa8   : > { %v475_v1 = vpop.permute.xlu0 %474  ;;  %v508_v33 = vmul.f32 %v1610_v53, %v480_v0  ;;  %v509_v34 = vmul.f32 %v1612_v54, %v480_v0  ;;  %v389_v35 = vpop.permute.xlu2 %388 }
  0xa9   : > { %v506_v21 = vmul.f32 %v1610_v53, %v475_v1  ;;  %v507_v22 = vmul.f32 %v1612_v54, %v475_v1  ;;  %v430_v7 = vmul.f32 %v1606_v51, %v389_v35  ;;  %v431_v13 = vmul.f32 %v1608_v52, %v389_v35 }
  0xaa   : > { %v524_v40 = vadd.f32 %v508_v33, %v438_v36  ;;  %v525_v41 = vadd.f32 %v509_v34, %v439_v37 }
  0xab   : > { %v522_v31 = vadd.f32 %v506_v21, %v436_v25  ;;  %v523_v32 = vadd.f32 %v507_v22, %v437_v26 }
  0xad   : > { %v586_v38 = vadd.f32 %v561_v14, %v522_v31  ;;  %v587_v39 = vadd.f32 %v561_v14, %v523_v32 }
  0xaf   : > { %v394_v11 = vpop.permute.xlu1 %393  ;;  %v602_v47 = vmul.f32 0.1, %v586_v38  ;;  %v603_v48 = vmul.f32 0.1, %v587_v39 }
  0xb0   : > { %v576_v10 = vpop.permute.xlu0 %575  ;;  %v551_v57 = vpop.permute.xlu2 %550  ;;  %v432_v62 = vmul.f32 %v1606_v51, %v394_v11  ;;  %v433_v63 = vmul.f32 %v1608_v52, %v394_v11 }
  0xb1   : > { %v592_v15 = vadd.f32 %v576_v10, %v528_v8  ;;  %v593_v16 = vadd.f32 %v576_v10, %v529_v9  ;;  %v618_v58 = vmax.f32 %v586_v38, %v602_v47  ;;  %v619_v42 = vmax.f32 %v587_v39, %v603_v48 }
  0xb3   : > { %v608_v17 = vmul.f32 0.1, %v592_v15  ;;  %v609_v18 = vmul.f32 0.1, %v593_v16 }
  0xb5   : > { %v624_v23 = vmax.f32 %v592_v15, %v608_v17  ;;  %v625_v24 = vmax.f32 %v593_v16, %v609_v18  ;;  %v434_v17 = vmul.f32 %v1606_v51, %v1618_v61  ;;  %v435_v18 = vmul.f32 %v1608_v52, %v1618_v61 }
  0xb7   : > { %v648_v27 = vpack.c.bf16 %v624_v23, %v622_v19  ;;  %v649_v28 = vpack.c.bf16 %v625_v24, %v623_v20  ;;  %v470_v30 = vpop.permute.xlu1 %469 }
  0xb8   : > { %v465_v29 = vpop.permute.xlu0 %464  ;;  %v504_v9 = vmul.f32 %v1610_v53, %v470_v30  ;;  %v505_v10 = vmul.f32 %v1612_v54, %v470_v30 }
  0xb9   : > { %815 = vmatpush.bf16.msra.mxu0 %v648_v27  ;;  %1156 = vmatpush.bf16.msra.mxu2 %v648_v27  ;;  %v502_v55 = vmul.f32 %v1610_v53, %v465_v29  ;;  %v503_v56 = vmul.f32 %v1612_v54, %v465_v29 }
  0xba   : > { %864 = vmatpush.bf16.msra.mxu1 %v649_v28  ;;  %1160 = vmatpush.bf16.msra.mxu3 %v649_v28  ;;  %v520_v22 = vadd.f32 %v504_v9, %v434_v17  ;;  %v356_v9 = vld [vmem:[%s1473_s11] sm:$0xff] }
  0xbb   : > { %v518_v2 = vadd.f32 %v502_v55, %v432_v62  ;;  %v519_v3 = vadd.f32 %v503_v56, %v433_v63  ;;  %v1147_v55 = vld [vmem:[%s1788_s5] sm:$0xff]  ;;  %v1154_v62 = vld [vmem:[%s1788_s5 + $0x38] sm:$0xff] }
  0xbc   : > { %v1151_v56 = vld [vmem:[%s1788_s5 + $0x20] sm:$0xff] }
  0xbd   : > { %v582_v15 = vadd.f32 %v551_v57, %v518_v2  ;;  %v583_v16 = vadd.f32 %v551_v57, %v519_v3  ;;  %v1148_v57 = vld [vmem:[%s1788_s5 + $0x8] sm:$0xff] }
  0xbf   : > { %v384_v44 = vpop.permute.xlu1 %383  ;;  %v598_v27 = vmul.f32 0.1, %v582_v15  ;;  %v599_v28 = vmul.f32 0.1, %v583_v16 }
  0xc0   : > { %v566_v43 = vpop.permute.xlu0 %565  ;;  %v428_v19 = vmul.f32 %v1606_v51, %v384_v44  ;;  %v429_v20 = vmul.f32 %v1608_v52, %v384_v44 }
  0xc1   : > { %v588_v45 = vadd.f32 %v566_v43, %v524_v40  ;;  %v589_v46 = vadd.f32 %v566_v43, %v525_v41  ;;  %v614_v36 = vmax.f32 %v582_v15, %v598_v27  ;;  %v615_v38 = vmax.f32 %v583_v16, %v599_v28 }
  0xc3   : > { %v604_v49 = vmul.f32 0.1, %v588_v45  ;;  %v605_v50 = vmul.f32 0.1, %v589_v46 }
  0xc5   : > { %v620_v59 = vmax.f32 %v588_v45, %v604_v49  ;;  %v621_v60 = vmax.f32 %v589_v46, %v605_v50 }
  0xc7   : > { %v646_v0 = vpack.c.bf16 %v620_v59, %v618_v58  ;;  %v647_v1 = vpack.c.bf16 %v621_v60, %v619_v42  ;;  %v460_v5 = vpop.permute.xlu1 %459  ;;  %v1152_v58 = vld [vmem:[%s1788_s5 + $0x28] sm:$0xff]  ;;  %v1149_v59 = vld [vmem:[%s1788_s5 + $0x10] sm:$0xff]  ;;  %v1150_v60 = vld [vmem:[%s1788_s5 + $0x18] sm:$0xff] }
  0xc8   : > { %v455_v4 = vpop.permute.xlu0 %454  ;;  %v500_v6 = vmul.f32 %v1610_v53, %v460_v5  ;;  %v501_v8 = vmul.f32 %v1612_v54, %v460_v5  ;;  %v1153_v42 = vld [vmem:[%s1788_s5 + $0x30] sm:$0xff] }
  0xc9   : > { %816 = vmatpush.bf16.msra.mxu0 %v646_v0  ;;  %1157 = vmatpush.bf16.msra.mxu2 %v646_v0  ;;  %v498_v11 = vmul.f32 %v1610_v53, %v455_v4  ;;  %v499_v12 = vmul.f32 %v1612_v54, %v455_v4  ;;  %v546_v53 = vpop.permute.xlu2 %545  ;;  %v521_v54 = vadd.f32 %v505_v10, %v435_v18 }
  0xca   : > { %865 = vmatpush.bf16.msra.mxu1 %v647_v1  ;;  %1161 = vmatpush.bf16.msra.mxu3 %v647_v1  ;;  %v516_v14 = vadd.f32 %v500_v6, %v430_v7  ;;  %v517_v21 = vadd.f32 %v501_v8, %v431_v13 }
  0xcb   : > { %v514_v23 = vadd.f32 %v498_v11, %v428_v19  ;;  %v515_v24 = vadd.f32 %v499_v12, %v429_v20  ;;  %v357_v11 = vld [vmem:[%s1473_s11 + $0x8] sm:$0xff] }
  0xcc   : > { %v580_v29 = vadd.f32 %v546_v53, %v516_v14  ;;  %v581_v61 = vadd.f32 %v546_v53, %v517_v21 }
  0xce   : > { %v596_v40 = vmul.f32 0.1, %v580_v29  ;;  %v597_v41 = vmul.f32 0.1, %v581_v61 }
  0xcf   : > { %v541_v26 = vpop.permute.xlu1 %540 }
  0xd0   : > { %v556_v25 = vpop.permute.xlu0 %555  ;;  %v578_v32 = vadd.f32 %v541_v26, %v514_v23  ;;  %v579_v33 = vadd.f32 %v541_v26, %v515_v24  ;;  %v612_v47 = vmax.f32 %v580_v29, %v596_v40  ;;  %v613_v48 = vmax.f32 %v581_v61, %v597_v41  ;;  %v358_v23 = vld [vmem:[%s1473_s11 + $0x10] sm:$0xff] }
  0xd1   : > { %v584_v30 = vadd.f32 %v556_v25, %v520_v22  ;;  %v585_v31 = vadd.f32 %v556_v25, %v521_v54  ;;  %v679_v0 = vpop.permute.xlu2 %678  ;;  %v359_v25 = vld [vmem:[%s1473_s11 + $0x18] sm:$0xff] }
  0xd2   : > { %v594_v35 = vmul.f32 0.1, %v578_v32  ;;  %v595_v52 = vmul.f32 0.1, %v579_v33 }
  0xd3   : > { %v600_v34 = vmul.f32 0.1, %v584_v30  ;;  %v601_v51 = vmul.f32 0.1, %v585_v31 }
  0xd4   : > { %v610_v45 = vmax.f32 %v578_v32, %v594_v35  ;;  %v611_v46 = vmax.f32 %v579_v33, %v595_v52  ;;  %v360_v52 = vld [vmem:[%s1473_s11 + $0x20] sm:$0xff] }
  0xd5   : > { %v616_v37 = vmax.f32 %v584_v30, %v600_v34  ;;  %v617_v39 = vmax.f32 %v585_v31, %v601_v51 }
  0xd6   : > { %v642_v49 = vpack.c.bf16 %v612_v47, %v610_v45  ;;  %v643_v50 = vpack.c.bf16 %v613_v48, %v611_v46 }
  0xd7   : > { %v644_v43 = vpack.c.bf16 %v616_v37, %v614_v36  ;;  %v645_v44 = vpack.c.bf16 %v617_v39, %v615_v38  ;;  %v674_v1 = vpop.permute.xlu1 %673  ;;  %v361_v37 = vld [vmem:[%s1473_s11 + $0x28] sm:$0xff] }
  0xd8   : > { %v669_v63 = vpop.permute.xlu0 %668 }
  0xd9   : > { %817 = vmatpush.bf16.msra.mxu0 %v644_v43  ;;  %1158 = vmatpush.bf16.msra.mxu2 %v644_v43  ;;  %v1692_v3 = vpop.permute.xlu2 %693 }
  0xda   : > { %866 = vmatpush.bf16.msra.mxu1 %v645_v44  ;;  %1162 = vmatpush.bf16.msra.mxu3 %v645_v44 }
  0xdd   : > { %818 = vmatpush.bf16.msra.mxu0 %v642_v49  ;;  %1159 = vmatpush.bf16.msra.mxu2 %v642_v49 }
  0xde   : > { %867 = vmatpush.bf16.msra.mxu1 %v643_v50  ;;  %1163 = vmatpush.bf16.msra.mxu3 %v643_v50 }
  0xdf   : > { %v1694_v6 = vpop.permute.xlu1 %688 }
  0xe0   : > { %1124 = vmatmul.msk.bf16.vlgmr.msra.gmra.mxu0 %vm786_vm0, %v1147_v55  ;;  %1128 = vmatmul.msk.bf16.vlgmr.msra.gmra.mxu2 %vm786_vm0, %v1151_v56  ;;  %v684_v2 = vpop.permute.xlu0 %683 }
  0xe1   : > { %1132 = vmatmul.msk.bf16.vlgmr.msra.gmra.mxu1 %vm786_vm0, %v1147_v55  ;;  %1136 = vmatmul.msk.bf16.vlgmr.msra.gmra.mxu3 %vm786_vm0, %v1151_v56  ;;  %v709_v12 = vpop.permute.xlu2 %708  ;;  %v362_v55 = vld [vmem:[%s1473_s11 + $0x30] sm:$0xff] }
  0xe7   : > { %v1705_v54 = vpop.permute.xlu1 %703 }
  0xe8   : > { %v1696_v8 = vpop.permute.xlu0 %698 }
  0xef   : > { %v719_v38 = vpop.permute.xlu1 %718 }
  0xf0   : > { %1125 = vmatmul.msk.bf16.gmra.mxu0 %vm786_vm0, %v1148_v57  ;;  %1129 = vmatmul.msk.bf16.gmra.mxu2 %vm786_vm0, %v1152_v58  ;;  %v714_v26 = vpop.permute.xlu0 %713 }
  0xf1   : > { %1133 = vmatmul.msk.bf16.gmra.mxu1 %vm786_vm0, %v1148_v57  ;;  %1137 = vmatmul.msk.bf16.gmra.mxu3 %vm786_vm0, %v1152_v58  ;;  %v363_v57 = vld [vmem:[%s1473_s11 + $0x38] sm:$0xff]  ;;  %v724_v58 = vpop.permute.xlu2 %723 }
 0x100   : > { %1126 = vmatmul.msk.bf16.gmra.mxu0 %vm786_vm0, %v1149_v59  ;;  %1130 = vmatmul.msk.bf16.gmra.mxu2 %vm786_vm0, %v1153_v42 }
 0x101   : > { %1134 = vmatmul.msk.bf16.gmra.mxu1 %vm786_vm0, %v1149_v59  ;;  %1138 = vmatmul.msk.bf16.gmra.mxu3 %vm786_vm0, %v1153_v42 }
 0x110   : > { %1127 = vmatmul.msk.bf16.gmra.mxu0 %vm786_vm0, %v1150_v60  ;;  %1131 = vmatmul.msk.bf16.gmra.mxu2 %vm786_vm0, %v1154_v62 }
 0x111   : > { %1135 = vmatmul.msk.bf16.gmra.mxu1 %vm786_vm0, %v1150_v60  ;;  %1139 = vmatmul.msk.bf16.gmra.mxu3 %vm786_vm0, %v1154_v62 }
 0x15d   : > { %v820_v4 = vpop.f32.mrf.mxu0 }
 0x15e   : > { %v869_v5 = vpop.f32.mrf.mxu1  ;;  %v821_v7 = vadd.f32 %v820_v4, %v669_v63 }
 0x15f   : > { %v870_v10 = vadd.f32 %v869_v5, %v669_v63 }
 0x160   : > { %v909_v14 = vmul.f32 %v821_v7, %v356_v9 }
 0x161   : > { %v910_v17 = vmul.f32 %v870_v10, %v357_v11  ;;  %v365_v11 = vld [vmem:[%s1473_s11 + $0x48] sm:$0xff] }
 0x163   : > { %v840_v13 = vpop.f32.mrf.mxu2 }
 0x164   : > { %v841_v15 = vadd.f32 %v840_v13, %v709_v12  ;;  %v889_v16 = vpop.f32.mrf.mxu3 }
 0x165   : > { %v890_v18 = vadd.f32 %v889_v16, %v709_v12  ;;  %v822_v19 = vpop.f32.mrf.mxu0  ;;  %v729_v12 = vpop.permute.xlu0 %728 }
 0x166   : > { %v925_v20 = vadd.f32 %v909_v14, %v841_v15  ;;  %v871_v21 = vpop.f32.mrf.mxu1  ;;  %v823_v22 = vadd.f32 %v822_v19, %v674_v1 }
 0x167   : > { %v926_v53 = vadd.f32 %v910_v17, %v890_v18  ;;  %v872_v24 = vadd.f32 %v871_v21, %v674_v1 }
 0x168   : > { %941 = vst [vmem:[%s1702_s23] sm:$0xff] %v925_v20  ;;  %v911_v28 = vmul.f32 %v823_v22, %v358_v23 }
 0x169   : > { %942 = vst [vmem:[%s1702_s23 + $0x8] sm:$0xff] %v926_v53  ;;  %v912_v31 = vmul.f32 %v872_v24, %v359_v25  ;;  %v367_v24 = vld [vmem:[%s1473_s11 + $0x58] sm:$0xff]  ;;  %v734_v25 = vpop.permute.xlu1 %733 }
 0x16b   : > { %v842_v27 = vpop.f32.mrf.mxu2 }
 0x16c   : > { %v843_v29 = vadd.f32 %v842_v27, %v714_v26  ;;  %v891_v30 = vpop.f32.mrf.mxu3 }
 0x16d   : > { %v892_v32 = vadd.f32 %v891_v30, %v714_v26  ;;  %v825_v33 = vpop.f32.mrf.mxu0 }
 0x16e   : > { %v927_v61 = vadd.f32 %v911_v28, %v843_v29  ;;  %v874_v34 = vpop.f32.mrf.mxu1  ;;  %v826_v35 = vadd.f32 %v825_v33, %v679_v0 }
 0x16f   : > { %v928_v51 = vadd.f32 %v912_v31, %v892_v32  ;;  %v875_v36 = vadd.f32 %v874_v34, %v679_v0 }
 0x170   : > { %943 = vst [vmem:[%s1702_s23 + $0x10] sm:$0xff] %v927_v61  ;;  %v913_v40 = vmul.f32 %v826_v35, %v360_v52  ;;  %v369_v52 = vld [vmem:[%s1473_s11 + $0x68] sm:$0xff] }
 0x171   : > { %944 = vst [vmem:[%s1702_s23 + $0x18] sm:$0xff] %v928_v51  ;;  %v914_v44 = vmul.f32 %v875_v36, %v361_v37  ;;  %v739_v36 = vpop.permute.xlu2 %738 }
 0x173   : > { %v845_v39 = vpop.f32.mrf.mxu2 }
 0x174   : > { %v846_v41 = vadd.f32 %v845_v39, %v719_v38  ;;  %v894_v43 = vpop.f32.mrf.mxu3 }
 0x175   : > { %v895_v45 = vadd.f32 %v894_v43, %v719_v38  ;;  %v827_v46 = vpop.f32.mrf.mxu0 }
 0x176   : > { %v929_v47 = vadd.f32 %v913_v40, %v846_v41  ;;  %v876_v48 = vpop.f32.mrf.mxu1  ;;  %v828_v50 = vadd.f32 %v827_v46, %v684_v2 }
 0x177   : > { %v930_v49 = vadd.f32 %v914_v44, %v895_v45  ;;  %v877_v56 = vadd.f32 %v876_v48, %v684_v2  ;;  %v364_v2 = vld [vmem:[%s1473_s11 + $0x40] sm:$0xff]  ;;  %v370_v48 = vld [vmem:[%s1473_s11 + $0x70] sm:$0xff] }
 0x178   : > { %945 = vst [vmem:[%s1702_s23 + $0x20] sm:$0xff] %v929_v47  ;;  %v915_v42 = vmul.f32 %v828_v50, %v362_v55  ;;  %v371_v50 = vld [vmem:[%s1473_s11 + $0x78] sm:$0xff]  ;;  %v744_v55 = vpop.permute.xlu0 %743 }
 0x179   : > { %946 = vst [vmem:[%s1702_s23 + $0x28] sm:$0xff] %v930_v49  ;;  %v916_v63 = vmul.f32 %v877_v56, %v363_v57 }
 0x17b   : > { %v847_v59 = vpop.f32.mrf.mxu2 }
 0x17c   : > { %v848_v60 = vadd.f32 %v847_v59, %v724_v58  ;;  %v896_v62 = vpop.f32.mrf.mxu3 }
 0x17d   : > { %v897_v0 = vadd.f32 %v896_v62, %v724_v58  ;;  %v830_v1 = vpop.f32.mrf.mxu0 }
 0x17e   : > { %v931_v4 = vadd.f32 %v915_v42, %v848_v60  ;;  %v879_v5 = vpop.f32.mrf.mxu1  ;;  %v831_v9 = vadd.f32 %v830_v1, %v1694_v6 }
 0x17f   : > { %v932_v7 = vadd.f32 %v916_v63, %v897_v0  ;;  %v880_v10 = vadd.f32 %v879_v5, %v1694_v6  ;;  %v366_v6 = vld [vmem:[%s1473_s11 + $0x50] sm:$0xff] }
 0x180   : > { %947 = vst [vmem:[%s1702_s23 + $0x30] sm:$0xff] %v931_v4  ;;  %v917_v14 = vmul.f32 %v831_v9, %v364_v2 }
 0x181   : > { %948 = vst [vmem:[%s1702_s23 + $0x38] sm:$0xff] %v932_v7  ;;  %v918_v17 = vmul.f32 %v880_v10, %v365_v11 }
 0x183   : > { %v850_v13 = vpop.f32.mrf.mxu2 }
 0x184   : > { %v851_v15 = vadd.f32 %v850_v13, %v729_v12  ;;  %v899_v16 = vpop.f32.mrf.mxu3 }
 0x185   : > { %v900_v18 = vadd.f32 %v899_v16, %v729_v12  ;;  %v832_v19 = vpop.f32.mrf.mxu0 }
 0x186   : > { %v933_v20 = vadd.f32 %v917_v14, %v851_v15  ;;  %v881_v21 = vpop.f32.mrf.mxu1  ;;  %v833_v22 = vadd.f32 %v832_v19, %v1692_v3 }
 0x187   : > { %v934_v53 = vadd.f32 %v918_v17, %v900_v18  ;;  %v882_v23 = vadd.f32 %v881_v21, %v1692_v3  ;;  %v368_v3 = vld [vmem:[%s1473_s11 + $0x60] sm:$0xff]  ;;  %s1280_s11 = scalar_lea.hbm %s1279_s19, 128 }
 0x188   : > { %949 = vst [vmem:[%s1702_s23 + $0x40] sm:$0xff] %v933_v20  ;;  %v919_v27 = vmul.f32 %v833_v22, %v366_v6  ;;  %p1281_p5 = scmp.ne.s32.totalorder %s1279_s19, %s1280_s11  ;;  %p1286_p10 = scmp.lt.s32.totalorder %s1284_s20, %s1280_s11 }
 0x189   : > { %950 = vst [vmem:[%s1702_s23 + $0x48] sm:$0xff] %v934_v53  ;;  %v920_v30 = vmul.f32 %v882_v23, %v367_v24 }
 0x18a   : > { %p1282_p6 = pnand %p1281_p5, %p1444_p9  ;;  %p1287_p13 = por %p1286_p10, %p1285_p8 }
 0x18b   : > { %v852_v26 = vpop.f32.mrf.mxu2 }
 0x18c   : > { %v853_v28 = vadd.f32 %v852_v26, %v734_v25  ;;  %v901_v29 = vpop.f32.mrf.mxu3  ;;  %p1283_p7 = pneg %p1282_p6 }
 0x18d   : > { %v902_v31 = vadd.f32 %v901_v29, %v734_v25  ;;  %v835_v32 = vpop.f32.mrf.mxu0 }
 0x18e   : > { %v935_v33 = vadd.f32 %v919_v27, %v853_v28  ;;  %v884_v61 = vpop.f32.mrf.mxu1  ;;  %v836_v51 = vadd.f32 %v835_v32, %v1696_v8  ;;  %p1288_p0 = pnand %p1287_p13, %p1283_p7 }
 0x18f   : > { %v936_v34 = vadd.f32 %v920_v30, %v902_v31  ;;  %v885_v35 = vadd.f32 %v884_v61, %v1696_v8 }
 0x190   : > { %951 = vst [vmem:[%s1702_s23 + $0x50] sm:$0xff] %v935_v33  ;;  %v921_v38 = vmul.f32 %v836_v51, %v368_v3 }
 0x191   : > { %952 = vst [vmem:[%s1702_s23 + $0x58] sm:$0xff] %v936_v34  ;;  %v922_v41 = vmul.f32 %v885_v35, %v369_v52 }
 0x193   : > { %v855_v37 = vpop.f32.mrf.mxu2 }
 0x194   : > { %v856_v39 = vadd.f32 %v855_v37, %v739_v36  ;;  %v904_v40 = vpop.f32.mrf.mxu3 }
 0x195   : > { %v905_v43 = vadd.f32 %v904_v40, %v739_v36  ;;  %v837_v44 = vpop.f32.mrf.mxu0 }
 0x196   : > { %v937_v45 = vadd.f32 %v921_v38, %v856_v39  ;;  %v886_v46 = vpop.f32.mrf.mxu1  ;;  %v838_v8 = vadd.f32 %v837_v44, %v1705_v54 }
 0x197   : > { %v938_v47 = vadd.f32 %v922_v41, %v905_v43  ;;  %v887_v49 = vadd.f32 %v886_v46, %v1705_v54 }
 0x198   : > { %953 = vst [vmem:[%s1702_s23 + $0x60] sm:$0xff] %v937_v45  ;;  %v923_v57 = vmul.f32 %v838_v8, %v370_v48 }
 0x199   : > { %954 = vst [vmem:[%s1702_s23 + $0x68] sm:$0xff] %v938_v47  ;;  %v924_v42 = vmul.f32 %v887_v49, %v371_v50 }
 0x19b   : > { %v857_v56 = vpop.f32.mrf.mxu2 }
 0x19c   : > { %v858_v58 = vadd.f32 %v857_v56, %v744_v55  ;;  %v906_v59 = vpop.f32.mrf.mxu3 }
 0x19d   : > { %v907_v60 = vadd.f32 %v906_v59, %v744_v55 }
 0x19e   : > { %v939_v62 = vadd.f32 %v923_v57, %v858_v58 }
 0x19f   : > { %v940_v63 = vadd.f32 %v924_v42, %v907_v60 }
 0x1a0   : > { %955 = vst [vmem:[%s1702_s23 + $0x70] sm:$0xff] %v939_v62 }
 0x1a1   : > { %956 = vst [vmem:[%s1702_s23 + $0x78] sm:$0xff] %v940_v63 }
 0x1a2   : > { %1291 = shalt.err (!%p1288_p0)
}
 0x1a3   : > { %s1351_s28 = smov 256   ;;  %s1352_s23 = smov 16  }
 0x1a4   : > { %1166 = dma.vmem_to_hbm [thread:$0]  (%p1444_p9), %s973_s27, 2048, %s975_s8, %s958_s10, %s1351_s28, %s1351_s28, %s1352_s23  }
 0x1a5 PF: > { %s989_s18 = sand.u32 1, %s1326_s24   ;;  %p1173_p1 = pnand %p1083_p12, %p1451_p11 }
 0x1a6   : > { %s990_s13 = scalar_lea.sflag [#allocation4], %s989_s18 }
 0x1a7   : > { %p1174_p2 = pneg %p1173_p1 }
 0x1a9   : > { %1321 = dma.done.wait (%p1174_p2), %s990_s13, 2048  }
 0x1aa   : > { %1323 = vsyncadd (%p1174_p2), %s990_s13, 4294965248  ;;  %s23_s29 = sadd.s32 1, %s1346_s29   ;;  %s1799_s27 = sld [smem:[#allocation8_spill]] }
 0x1ab   : > { %p20_p3 = scmp.ge.s32.totalorder %s23_s29, 4   ;;  %s1800_s28 = sld [smem:[#allocation9_spill]] }
 0x1ac   : > { %s1801_s24 = smov %s1330_s25  ;;  %s1802_s25 = smov %s1334_s26 }
 0x1ad   : > { %s1803_s26 = smov %s1449_s15  ;;  %22 = sbr.rel (!%p20_p3) target bundleno = 6 (0x6), region = 96 }
 0x1b2   :  { %996 = vsyncpa [#allocation3], 1 }
 0x1b3   :  { %998 = vsyncpa [#allocation3 + $0x1], 1 }
 0x1b4   :  { %999 = vsyncpa [#allocation4], 1 }
 0x1b5   :  { %1001 = vsyncpa [#allocation4 + $0x1], 1 }

</bundles_post_ra>
